<compile_context>
chip_gen: v5e
topology: v5e:2x2
jax: 0.10.0
libtpu: 0.0.40
codegen_flags: <defaults>
</compile_context>

<pallas_src>
import functools
import math

import jax
import jax.numpy as jnp
from jax import lax
from jax.experimental import pallas as pl
from jax.experimental.pallas import tpu as pltpu

_LANES = 128
_MAX_BLK_ROWS = 1024        # 1024 x 128 f32 = 512 KiB per input block


def _focal_loss_kernel(x_ref, t_ref, out_ref, *, alpha, gamma, n_total,
                       mask_tail):
    """One grid step: focal loss on a (BLK, 128) tile, partially reduced to
    an (8, 128) slab written to this block's output row-group."""
    blk = x_ref.shape[0]
    i = pl.program_id(0)

    x = x_ref[...]                                   # f32 probabilities
    t = t_ref[...].astype(jnp.float32)               # bf16 {0,1} labels -> f32
    is_pos = t > 0.5

    # Binary targets: probability assigned to the true class.
    p_t = jnp.where(is_pos, x, 1.0 - x)
    # F.binary_cross_entropy clamps log terms at -100.
    bce = -jnp.maximum(jnp.log(p_t), -100.0)
    # pt = exp(-bce) == max(p_t, exp(-100)); avoids a second transcendental.
    pt = jnp.maximum(p_t, jnp.float32(math.exp(-100.0)))

    # alpha_vec = [alpha, 1 - alpha]; gather by label.
    at = jnp.where(is_pos, jnp.float32(1.0 - alpha), jnp.float32(alpha))

    one_m_pt = 1.0 - pt
    if float(gamma).is_integer():
        focal = lax.integer_pow(one_m_pt, int(gamma))      # VALU-only
    else:
        focal = one_m_pt ** jnp.float32(gamma)             # EUP exp/log path

    f_loss = at * focal * bce

    if mask_tail:
        base = i * (blk * _LANES)
        rows = lax.broadcasted_iota(jnp.int32, (blk, _LANES), 0)
        cols = lax.broadcasted_iota(jnp.int32, (blk, _LANES), 1)
        elem = base + rows * _LANES + cols
        f_loss = jnp.where(elem < n_total, f_loss, 0.0)

    # Reduce BLK rows -> 8 rows with plain vreg adds (VALU); the cross-lane
    # reduction happens once, outside the kernel.
    out_ref[...] = jnp.sum(f_loss.reshape(blk // 8, 8, _LANES), axis=0)


def weighted_focal_loss(inputs, targets, *, alpha=0.5, gamma=2,
                        reduction=True):
    """Pallas implementation of WeightedFocalLoss.forward (logits=False,
    binary {0,1} targets)."""
    # TODO(synk): logits=True path (binary_cross_entropy_with_logits) not
    # implemented; module default is logits=False.
    n = inputs.size
    rows = -(-n // _LANES)                   # ceil(n / 128)
    rows = -(-rows // 16) * 16               # bf16 packs 16 sublanes/vreg
    blk = min(_MAX_BLK_ROWS, rows)
    rows = -(-rows // blk) * blk             # whole number of blocks
    g = rows // blk
    pad = rows * _LANES - n

    x = inputs.reshape(-1).astype(jnp.float32)
    t = targets.reshape(-1).astype(jnp.float32)
    if pad:
        x = jnp.pad(x, (0, pad), constant_values=0.5)   # log-safe pad value
        t = jnp.pad(t, (0, pad))
    x = x.reshape(rows, _LANES)
    t = t.reshape(rows, _LANES).astype(jnp.bfloat16)    # halve target traffic

    kernel = functools.partial(
        _focal_loss_kernel, alpha=float(alpha), gamma=gamma,
        n_total=n, mask_tail=bool(pad))

    partials = pl.pallas_call(
        kernel,
        out_shape=jax.ShapeDtypeStruct((g * 8, _LANES), jnp.float32),
        grid_spec=pltpu.PrefetchScalarGridSpec(
            num_scalar_prefetch=0,
            grid=(g,),
            in_specs=[
                pl.BlockSpec((blk, _LANES), lambda i: (i, 0)),
                pl.BlockSpec((blk, _LANES), lambda i: (i, 0)),
            ],
            out_specs=pl.BlockSpec((8, _LANES), lambda i: (i, 0)),
        ),
        compiler_params=pltpu.CompilerParams(
            dimension_semantics=("parallel",)),
    )(x, t)

    total = jnp.sum(partials)
    return total / jnp.float32(n) if reduction else total


def _reference(inputs, targets, *, alpha=0.5, gamma=2, reduction=True):
    """Pure-JAX reference mirroring the PyTorch module."""
    x = inputs.astype(jnp.float32)
    t = targets.astype(jnp.float32)
    bce = -(t * jnp.maximum(jnp.log(x), -100.0)
            + (1.0 - t) * jnp.maximum(jnp.log(1.0 - x), -100.0))
    alpha_vec = jnp.array([alpha, 1.0 - alpha], dtype=jnp.float32)
    at = alpha_vec[targets.astype(jnp.int32).reshape(-1)]
    pt = jnp.exp(-bce)
    f_loss = at * (1.0 - pt) ** gamma * bce
    return jnp.mean(f_loss) if reduction else jnp.sum(f_loss)


if __name__ == "__main__":
    key = jax.random.PRNGKey(0)
    k1, k2, k3, k4 = jax.random.split(key, 4)

    # Small case: a flattened batch of breakout predictions.
    N = 2048
    probs = jax.nn.sigmoid(jax.random.normal(k1, (N,), dtype=jnp.float32))
    labels = (jax.random.uniform(k2, (N,)) > 0.5).astype(jnp.float32)

    alpha, gamma = 0.25, 2
    loss = weighted_focal_loss(probs, labels, alpha=alpha, gamma=gamma,
                               reduction=True)
    loss = jax.block_until_ready(loss)
    ref = _reference(probs, labels, alpha=alpha, gamma=gamma, reduction=True)
    assert jnp.allclose(loss, ref, rtol=1e-4, atol=1e-6), (loss, ref)

    # Larger, non-multiple-of-128 length: exercises big blocks + tail mask.
    N2 = 300_001
    probs2 = jax.nn.sigmoid(jax.random.normal(k3, (N2,), dtype=jnp.float32))
    labels2 = (jax.random.uniform(k4, (N2,)) > 0.5).astype(jnp.float32)
    loss2 = jax.block_until_ready(
        weighted_focal_loss(probs2, labels2, alpha=0.5, gamma=2,
                            reduction=False))
    ref2 = _reference(probs2, labels2, alpha=0.5, gamma=2, reduction=False)
    assert jnp.allclose(loss2, ref2, rtol=1e-4, atol=1e-3), (loss2, ref2)

    print("KERNEL_OK")
</pallas_src>

<mosaic_0001>
module attributes {stable_mosaic.version = 11 : i64} {
  func.func @_focal_loss_kernel(%arg0: i32, %arg1: memref<16x128xf32, #tpu.memory_space<vmem>>, %arg2: memref<16x128xbf16, #tpu.memory_space<vmem>>, %arg3: memref<8x128xf32, #tpu.memory_space<vmem>>) attributes {dimension_semantics = [#tpu.dimension_semantics<parallel>], iteration_bounds = array<i64: 1>, scalar_prefetch = 0 : i64, scratch_operands = 0 : i64, tpu.core_type = #tpu.core_type<tc>, window_params = [{transform_indices = @transform_0, window_bounds = array<i64: 16, 128>}, {transform_indices = @transform_1, window_bounds = array<i64: 16, 128>}, {transform_indices = @transform_2, window_bounds = array<i64: 8, 128>}]} {
    %c0 = arith.constant 0 : index
    %c0_0 = arith.constant 0 : index
    %0 = vector.load %arg1[%c0, %c0_0] : memref<16x128xf32, #tpu.memory_space<vmem>>, vector<16x128xf32>
    %c0_1 = arith.constant 0 : index
    %c0_2 = arith.constant 0 : index
    %1 = vector.load %arg2[%c0_1, %c0_2] : memref<16x128xbf16, #tpu.memory_space<vmem>>, vector<16x128xbf16>
    %2 = arith.extf %1 : vector<16x128xbf16> to vector<16x128xf32>
    %cst = arith.constant 5.000000e-01 : f32
    %3 = vector.broadcast %cst : f32 to vector<16x128xf32>
    %4 = arith.cmpf ogt, %2, %3 : vector<16x128xf32>
    %cst_3 = arith.constant 1.000000e+00 : f32
    %5 = vector.broadcast %cst_3 : f32 to vector<16x128xf32>
    %6 = arith.subf %5, %0 : vector<16x128xf32>
    %7 = arith.select %4, %0, %6 : vector<16x128xi1>, vector<16x128xf32>
    %8 = math.log %7 : vector<16x128xf32>
    %cst_4 = arith.constant -1.000000e+02 : f32
    %9 = vector.broadcast %cst_4 : f32 to vector<16x128xf32>
    %10 = arith.maximumf %8, %9 : vector<16x128xf32>
    %cst_5 = arith.constant 0.000000e+00 : f32
    %11 = vector.broadcast %cst_5 : f32 to vector<16x128xf32>
    %12 = arith.subf %11, %10 : vector<16x128xf32>
    %cst_6 = arith.constant 3.783510e-44 : f32
    %13 = vector.broadcast %cst_6 : f32 to vector<16x128xf32>
    %14 = arith.maximumf %7, %13 : vector<16x128xf32>
    %cst_7 = arith.constant 7.500000e-01 : f32
    %cst_8 = arith.constant 2.500000e-01 : f32
    %15 = vector.broadcast %cst_7 : f32 to vector<16x128xf32>
    %16 = vector.broadcast %cst_8 : f32 to vector<16x128xf32>
    %17 = arith.select %4, %15, %16 : vector<16x128xi1>, vector<16x128xf32>
    %cst_9 = arith.constant 1.000000e+00 : f32
    %18 = vector.broadcast %cst_9 : f32 to vector<16x128xf32>
    %19 = arith.subf %18, %14 : vector<16x128xf32>
    %20 = arith.mulf %19, %19 : vector<16x128xf32>
    %21 = arith.mulf %17, %20 : vector<16x128xf32>
    %22 = arith.mulf %21, %12 : vector<16x128xf32>
    %23 = vector.shape_cast %22 : vector<16x128xf32> to vector<2x8x128xf32>
    %cst_10 = arith.constant dense<0.000000e+00> : vector<8x128xf32>
    %24 = vector.multi_reduction <add>, %23, %cst_10 [0] : vector<2x8x128xf32> to vector<8x128xf32>
    %c0_11 = arith.constant 0 : index
    %c0_12 = arith.constant 0 : index
    %25 = vector.load %arg3[%c0_11, %c0_12] : memref<8x128xf32, #tpu.memory_space<vmem>>, vector<8x128xf32>
    tpu.vector_store %arg3[%c0_11, %c0_12], %24 {strides = array<i32>} : memref<8x128xf32, #tpu.memory_space<vmem>>, vector<8x128xf32>,
    return
  }
  func.func @transform_0(%arg0: i32) -> (i32, i32) {
    %c0_i32 = arith.constant 0 : i32
    %c0_i32_0 = arith.constant 0 : i32
    return %arg0, %c0_i32 : i32, i32
  }
  func.func @transform_1(%arg0: i32) -> (i32, i32) {
    %c0_i32 = arith.constant 0 : i32
    %c0_i32_0 = arith.constant 0 : i32
    return %arg0, %c0_i32 : i32, i32
  }
  func.func @transform_2(%arg0: i32) -> (i32, i32) {
    %c0_i32 = arith.constant 0 : i32
    %c0_i32_0 = arith.constant 0 : i32
    return %arg0, %c0_i32 : i32, i32
  }
}

</mosaic_0001>

<bundles_post_ra>
// kernel: tpu_custom_call.1
= control target key start
LH: loop header
LB: loop body
LE: loop exit
PB: predicated region body
PF: predicated region fallthrough
CT: control target
= control target key end

     0   :  { %7 = vsyncpa [#allocation3], 0  ;;  %s230_s0 = inlined_call_operand.hbm [shape: f32[16,128], index: 0, kind: input, shape index: {}]   ;;  %s231_s1 = inlined_call_operand.hbm [shape: bf16[16,128], index: 1, kind: input, shape index: {}]   ;;  %s232_s2 = inlined_call_operand.hbm [shape: f32[8,128], index: 2, kind: output, shape index: {}]  }
   0x1   :  { %8 = vsyncpa [#allocation6], 0 }
   0x2   :  { %9 = vsyncpa [#allocation4], 0  ;;  %s14_s11 = sshll.u32 %s230_s0, 4  ;;  %s190_s12 = smov [#allocation2]   ;;  %s15_s11 = int_to_ptr.hbm [resolvable:$true] %s14_s11 }
   0x3   :  { %s16_s13 = sshll.u32 %s190_s12, 4  ;;  %s27_s16 = sshll.u32 %s231_s1, 4  ;;  %s17_s13 = int_to_ptr.vmem [resolvable:$true] %s16_s13  ;;  %s28_s16 = int_to_ptr.hbm [resolvable:$true] %s27_s16 }
   0x4   :  { %s191_s17 = smov 128   ;;  %s192_s18 = smov 8  }
   0x5   :  { %22 = dma.hbm_to_vmem [thread:$0]  %s15_s11, 256, %s17_s13, [#allocation3], %s191_s17, %s191_s17, %s192_s18  }
   0x6   :  { %s193_s19 = smov [#allocation5]   ;;  %s194_s21 = smov 64  }
   0x7   :  { %s29_s20 = sshll.u32 %s193_s19, 4  ;;  %s195_s22 = smov 4   ;;  %s30_s20 = int_to_ptr.vmem [resolvable:$true] %s29_s20 }
   0x8   :  { %35 = dma.hbm_to_vmem [thread:$0]  %s28_s16, 128, %s30_s20, [#allocation6], %s194_s21, %s194_s21, %s195_s22  }
   0x9   :  { %184 = dma.done.wait [#allocation3], 256  }
   0xa   :  { %185 = vsyncadd [#allocation3], 4294967040 }
   0xb   :  { %186 = dma.done.wait [#allocation6], 128  }
   0xc   :  { %187 = vsyncadd [#allocation6], 4294967168  ;;  %v44_v0 = vld [vmem:[#allocation2] sm:$0xff]  ;;  %v45_v1 = vld [vmem:[#allocation2 + $0x8] sm:$0xff]  ;;  %v196_v16 = vmov 0.25   ;;  %s197_s0 = smov [#allocation7]  }
   0xd   :  { %v97_v2 = vld [vmem:[#allocation5] sm:$0xff]   ;;  %v52_v5 = vsub.f32 1.0, %v44_v0  ;;  %v53_v6 = vsub.f32 1.0, %v45_v1  ;;  %s83_s1 = sshll.u32 %s197_s0, 4  ;;  %s85_s25 = sshll.u32 %s232_s2, 4  ;;  %s84_s1 = int_to_ptr.vmem [resolvable:$true] %s83_s1  ;;  %s86_s25 = int_to_ptr.hbm [resolvable:$true] %s85_s25 }
   0xe   :  { %v98_v3 = vunpack.c.l.bf16 %v97_v2  ;;  %v99_v4 = vunpack.c.h.bf16 %v97_v2 }
  0x10   :  { %vm50_vm0 = vcmp.gt.f32.partialorder %v98_v3, 0.5  ;;  %vm219_vm1 = vcmp.gt.f32.partialorder %v99_v4, 0.5 }
  0x11   :  { %v54_v8 = vsel %vm50_vm0, %v44_v0, %v52_v5  ;;  %v55_v9 = vsel %vm219_vm1, %v45_v1, %v53_v6  ;;  %v66_v17 = vsel %vm50_vm0, 0.75, %v196_v16  ;;  %v67_v21 = vsel %vm219_vm1, 0.75, %v196_v16 }
  0x12   :  { %108 = vlog2.f32 %v54_v8  ;;  %v64_v10 = vmax.f32 %v54_v8, 3.8e-44  ;;  %v65_v11 = vmax.f32 %v55_v9, 3.8e-44 }
  0x13   :  { %110 = vlog2.f32 %v55_v9 }
  0x14   :  { %v68_v12 = vsub.f32 1.0, %v64_v10  ;;  %v69_v13 = vsub.f32 1.0, %v65_v11 }
  0x16   :  { %v70_v14 = vmul.f32 %v68_v12, %v68_v12  ;;  %v71_v18 = vmul.f32 %v69_v13, %v69_v13 }
  0x18   :  { %v109_v15 = vpop.eup %108  ;;  %v72_v24 = vmul.f32 %v70_v14, %v66_v17  ;;  %v73_v26 = vmul.f32 %v71_v18, %v67_v21 }
  0x19   :  { %v111_v19 = vpop.eup %110  ;;  %v57_v20 = vmul.f32 0.6931472, %v109_v15 }
  0x1a   :  { %v59_v22 = vmul.f32 0.6931472, %v111_v19 }
  0x1b   :  { %v60_v23 = vmax.f32 %v57_v20, -100.0 }
  0x1c   :  { %v61_v25 = vmax.f32 %v59_v22, -100.0 }
  0x1d   :  { %v62_v27 = vsub.f32 0.0, %v60_v23 }
  0x1e   :  { %v63_v28 = vsub.f32 0.0, %v61_v25 }
  0x1f   :  { %v74_v29 = vmul.f32 %v72_v24, %v62_v27 }
  0x20   :  { %v75_v30 = vmul.f32 %v73_v26, %v63_v28 }
  0x22   :  { %v76_v31 = vadd.f32 %v75_v30, %v74_v29 }
  0x24   :  { %77 = vst [vmem:[#allocation7] sm:$0xff] %v76_v31 }
  0x25   :  { %88 = dma.vmem_to_hbm [thread:$0]  %s84_s1, 128, %s86_s25, [#allocation4]  }
  0x26   :  { %188 = dma.done.wait [#allocation4], 128  }
  0x27   :  { %189 = vsyncadd [#allocation4], 4294967168 }
  0x28   :  { %93 = vsyncpa [#allocation3], 1 }
  0x29   :  { %94 = vsyncpa [#allocation6], 1 }
  0x2a   :  { %95 = vsyncpa [#allocation4], 1 }

</bundles_post_ra>
